<compile_context>
chip_gen: v5e
topology: v5e:2x2
jax: 0.10.0
libtpu: 0.0.40
codegen_flags: <defaults>
</compile_context>

<pallas_src>
import functools

import jax
import jax.numpy as jnp
from jax.experimental import pallas as pl
from jax.experimental.pallas import tpu as pltpu


def _attention_kernel(xes_ref, hid_ref, enc_ref, *rest, approx, has_bias):
    """One batch tile of AttentionLayer.forward (attn_type='general')."""
    if has_bias:
        bias_ref, w_attn_t_ref, w_cx_t_ref, w_ca_t_ref, out_ref = rest
    else:
        bias_ref = None
        w_attn_t_ref, w_cx_t_ref, w_ca_t_ref, out_ref = rest

    xes = xes_ref[...]       # (TB, E)  compute dtype
    hid = hid_ref[...]       # (TB, H)  compute dtype
    enc = enc_ref[...]       # (TB, T, HX)  native HBM dtype (f32 or bf16)

    # hid = self.attn(hid) -> (TB, HX); weight pre-transposed in the wrapper.
    proj = jnp.dot(hid, w_attn_t_ref[...], preferred_element_type=jnp.float32)

    # attn_w_premask = bmm(hid, enc_out.transpose(1,2)) -> (TB, T)
    # Flash-attention orientation: both operands contract on their last (lane)
    # dim, so no transpose/relayout of the enc block is needed and the result
    # (TB, 1, T) stays lane-dense in T.
    scores = jnp.einsum(
        'bqh,bth->bqt', proj[:, None, :].astype(enc.dtype), enc,
        preferred_element_type=jnp.float32)[:, 0, :]          # (TB, T) f32
    if has_bias:
        # mask folded into an additive bias precomputed in the wrapper
        scores = scores + bias_ref[...].astype(jnp.float32)

    # softmax over T in f32; EUP approximate reciprocal on the perf path.
    m = jnp.max(scores, axis=1, keepdims=True)
    e = jnp.exp(scores - m)                                   # (TB, T) f32
    inv = pl.reciprocal(jnp.sum(e, axis=1, keepdims=True), approx=approx)

    # attn_applied = bmm(attn_weights, enc_out) -> (TB, HX)
    # Done on the VPU (broadcast multiply + reduce over T), with normalization
    # deferred to the small (TB, HX) result: the enc block is not re-pushed
    # through the MXU weight path for an M=1 matmul, and the VALU/XLU share the
    # per-enc-element work with the MXU-driven scores contraction above.
    # TODO(synk): verify with a bundle dump which slot saturates on v7x.
    prod = e[:, :, None] * enc.astype(jnp.float32)            # (TB, T, HX) f32
    applied = jnp.sum(prod, axis=1) * inv                     # (TB, HX) f32

    # output = tanh(attn_combine(cat(xes, applied)))
    # concat eliminated: the combine weight was split in the wrapper.
    out = jnp.tanh(
        jnp.dot(xes, w_cx_t_ref[...], preferred_element_type=jnp.float32)
        + jnp.dot(applied.astype(w_ca_t_ref.dtype), w_ca_t_ref[...],
                  preferred_element_type=jnp.float32))
    out_ref[...] = out.astype(out_ref.dtype)


def _vmem_budget_and_limit():
    """Per-generation VMEM sizing (conservative fallback if the query fails)."""
    cap = None
    try:
        cap = getattr(pltpu.get_tpu_info(), "vmem_capacity_bytes", None)
    except Exception:
        cap = None
    if cap is None or cap <= 64 * 1024 * 1024:
        # v7x-class (64 MiB per TensorCore) or unknown: stay conservative.
        return 20 * 1024 * 1024, 32 * 1024 * 1024
    # 128 MiB parts (v5e / v6e): bigger tiles push mem-bound kernels toward
    # the HBM roofline.
    return 56 * 1024 * 1024, 100 * 1024 * 1024


def _pick_block_b(batch, t, hx, e, h, enc_itemsize, small_itemsize, has_bias,
                  target_tb, vmem_budget_bytes, weight_bytes):
    """Largest batch tile whose double-buffered blocks + temporaries fit."""
    budget = max(vmem_budget_bytes - 2 * weight_bytes, 2 * 1024 * 1024)
    per_row = (2 * enc_itemsize * t * hx             # enc block, double-buffered
               + 2 * small_itemsize * (e + h)        # xes + hidden
               + (2 * small_itemsize * t if has_bias else 0)
               + 2 * 4 * e                           # f32 output
               + 8 * t * hx                          # in-kernel f32 temporaries
               + 64 * t + 16 * hx)                   # scores/e rows, proj/applied
    tb = min(batch, max(8, target_tb))
    while tb > 8 and tb * per_row > budget:
        tb //= 2
    # Megacore (v7x): keep >= 2 grid blocks whenever the batch can be split on
    # 8-row granularity so dimension_semantics=("parallel",) feeds both
    # TensorCores; near-free on single-core parts (~0.35 us per extra step).
    if batch >= 16:
        half = -(-batch // 2)           # ceil(B / 2)
        half = -(-half // 8) * 8        # round up to a multiple of 8
        tb = min(tb, half)
    if tb < batch:
        tb = max(8, (tb // 8) * 8)      # (8,128) block constraint when tiled
    return min(tb, batch)


def attention_layer_general(xes, hidden, enc_out, attn_mask, w_attn, w_combine,
                            *, compute_dtype=jnp.bfloat16, approx=True,
                            target_block_b=256):
    """Pallas AttentionLayer.forward for attn_type='general', attn_time='pre'."""
    if isinstance(hidden, tuple):
        hidden = hidden[0]
    last_hidden = hidden[-1]                     # (B, H)
    xes2d = jnp.squeeze(xes, axis=1)             # (B, E)

    B, T, HX = enc_out.shape
    E = xes2d.shape[1]
    H = last_hidden.shape[1]
    assert w_attn.shape == (HX, H), w_attn.shape
    assert w_combine.shape == (E, HX + E), w_combine.shape

    compute_dtype = jnp.dtype(compute_dtype)
    enc_dtype = jnp.dtype(enc_out.dtype)

    # Only the SMALL streams are cast in the wrapper (negligible bytes).
    # enc_out deliberately stays in its native dtype so the dominant tensor is
    # read from HBM exactly once, with no extra full-tensor cast pass.
    xes_c = xes2d.astype(compute_dtype)
    hid_c = last_hidden.astype(compute_dtype)
    w_attn_t = jnp.asarray(w_attn, compute_dtype).T           # (H, HX)
    w_cx_t = jnp.asarray(w_combine[:, :E], compute_dtype).T   # (E, E)   pairs with xes
    w_ca_t = jnp.asarray(w_combine[:, E:], compute_dtype).T   # (HX, E)  pairs with applied

    has_bias = attn_mask is not None
    if has_bias:
        #   scores - (1 - mask) * 1e20  ==  scores + (mask - 1) * 1e20
        bias = ((attn_mask.astype(jnp.float32) - 1.0) * 1e20).astype(compute_dtype)

    vmem_budget, vmem_limit = _vmem_budget_and_limit()
    weight_bytes = (H * HX + E * E + HX * E) * compute_dtype.itemsize
    tb = _pick_block_b(B, T, HX, E, H, enc_dtype.itemsize, compute_dtype.itemsize,
                       has_bias, target_block_b, vmem_budget, weight_bytes)
    n_blocks = pl.cdiv(B, tb)
    # NOTE: when tb does not divide B there is NO jnp.pad of enc_out (that would
    # be a full extra HBM pass over the dominant tensor).  The last grid block
    # is a Pallas edge block: rows past B hold unspecified data, but every op in
    # the kernel is row-local (matvec / softmax / reduce within the row), and
    # the out-of-bounds output stores are dropped.  Do not "fix" this by
    # reintroducing padding.

    kernel = functools.partial(_attention_kernel, approx=approx, has_bias=has_bias)

    in_specs = [
        pl.BlockSpec((tb, E), lambda b: (b, 0)),          # xes
        pl.BlockSpec((tb, H), lambda b: (b, 0)),          # last hidden
        pl.BlockSpec((tb, T, HX), lambda b: (b, 0, 0)),   # enc_out (native dtype)
    ]
    args = [xes_c, hid_c, enc_out]
    if has_bias:
        in_specs.append(pl.BlockSpec((tb, T), lambda b: (b, 0)))   # mask bias
        args.append(bias)
    in_specs += [
        pl.BlockSpec((H, HX), lambda b: (0, 0)),          # W_attn^T (replicated)
        pl.BlockSpec((E, E), lambda b: (0, 0)),           # W_combine[:, :E]^T
        pl.BlockSpec((HX, E), lambda b: (0, 0)),          # W_combine[:, E:]^T
    ]
    args += [w_attn_t, w_cx_t, w_ca_t]

    small = compute_dtype.itemsize
    bytes_accessed = int(
        B * T * HX * enc_dtype.itemsize                   # enc_out read
        + B * (E + H) * small                             # xes + hidden
        + (B * T * small if has_bias else 0)              # mask bias
        + weight_bytes                                    # weights
        + B * E * 4)                                      # output
    cost = pl.CostEstimate(
        flops=int(2 * B * (H * HX + 2 * T * HX + E * E + HX * E)),
        transcendentals=int(B * (T + E)),                 # exp + tanh
        bytes_accessed=bytes_accessed)

    # Output is tiny relative to enc_out; E < 128 means masked partial stores,
    # accepted as a negligible cost to keep the module's f32 return dtype.
    out2d = pl.pallas_call(
        kernel,
        out_shape=jax.ShapeDtypeStruct((B, E), jnp.float32),
        grid_spec=pltpu.PrefetchScalarGridSpec(
            num_scalar_prefetch=0,
            grid=(n_blocks,),
            in_specs=in_specs,
            out_specs=pl.BlockSpec((tb, E), lambda b: (b, 0)),
        ),
        compiler_params=pltpu.CompilerParams(
            dimension_semantics=("parallel",),            # megacore sharding on v7x
            vmem_limit_bytes=vmem_limit,
        ),
        cost_estimate=cost,
    )(*args)

    return out2d[:, None, :]                              # (B, 1, E)


def _reference(xes, hidden, enc_out, attn_mask, w_attn, w_combine):
    """Pure-JAX reference mirroring the PyTorch forward (attn_type='general')."""
    last_hidden = hidden[-1]
    hid = last_hidden[:, None, :]                                  # (B,1,H)
    hid = hid @ w_attn.T                                           # (B,1,HX)
    premask = jnp.einsum('bih,bth->bit', hid, enc_out)[:, 0, :]    # (B,T)
    if attn_mask is not None:
        premask = premask - (1.0 - attn_mask) * 1e20
    w = jax.nn.softmax(premask, axis=1)
    applied = jnp.einsum('bt,bth->bh', w, enc_out)                 # (B,HX)
    merged = jnp.concatenate([jnp.squeeze(xes, 1), applied], axis=1)
    return jnp.tanh(merged @ w_combine.T)[:, None, :]


if __name__ == "__main__":
    # Small shapes consistent with the module
    B, T = 2, 8          # batch, encoder seq len
    H = 32               # hidden_size
    HX = H               # hidden_size * num_dirs (unidirectional)
    E = 32               # emb_size (attn_time='pre' -> input_dim = emb_size)
    L = 2                # decoder rnn layers

    key = jax.random.PRNGKey(0)
    k1, k2, k3, k4, k5 = jax.random.split(key, 5)

    xes = jax.random.normal(k1, (B, 1, E), dtype=jnp.float32)
    hidden = jax.random.normal(k2, (L, B, H), dtype=jnp.float32)
    enc_out = jax.random.normal(k3, (B, T, HX), dtype=jnp.float32)

    # mask: batch 0 fully valid, batch 1 has last 3 positions masked out
    attn_mask = jnp.ones((B, T), dtype=jnp.float32)
    attn_mask = attn_mask.at[1, T - 3:].set(0.0)

    # nn.Linear default init: uniform(-1/sqrt(fan_in), 1/sqrt(fan_in))
    w_attn = jax.random.uniform(k4, (HX, H), dtype=jnp.float32,
                                minval=-1.0 / (H ** 0.5), maxval=1.0 / (H ** 0.5))
    w_combine = jax.random.uniform(k5, (E, HX + E), dtype=jnp.float32,
                                   minval=-1.0 / ((HX + E) ** 0.5),
                                   maxval=1.0 / ((HX + E) ** 0.5))

    ref = _reference(xes, hidden, enc_out, attn_mask, w_attn, w_combine)

    # 1) strict f32 path: exact-semantics check against the reference.
    out_f32 = attention_layer_general(xes, hidden, enc_out, attn_mask,
                                      w_attn, w_combine,
                                      compute_dtype=jnp.float32, approx=False)
    out_f32 = jax.block_until_ready(out_f32)
    assert out_f32.shape == (B, 1, E), out_f32.shape
    assert jnp.allclose(out_f32, ref, atol=3e-5, rtol=1e-5), \
        f"f32 max abs err {jnp.max(jnp.abs(out_f32 - ref))}"

    # 2) performance path: bf16 small streams / weights, enc_out left in native
    #    dtype, f32 accumulation + f32 softmax, EUP approximate reciprocal.
    out_bf16 = attention_layer_general(xes, hidden, enc_out, attn_mask,
                                       w_attn, w_combine,
                                       compute_dtype=jnp.bfloat16, approx=True)
    out_bf16 = jax.block_until_ready(out_bf16)
    assert out_bf16.shape == (B, 1, E), out_bf16.shape
    assert jnp.allclose(out_bf16, ref, atol=5e-2, rtol=5e-2), \
        f"bf16 max abs err {jnp.max(jnp.abs(out_bf16 - ref))}"

    # 3) no-mask specialization (bias stream elided entirely).
    ref_nm = _reference(xes, hidden, enc_out, None, w_attn, w_combine)
    out_nm = attention_layer_general(xes, hidden, enc_out, None,
                                     w_attn, w_combine,
                                     compute_dtype=jnp.float32, approx=False)
    out_nm = jax.block_until_ready(out_nm)
    assert jnp.allclose(out_nm, ref_nm, atol=3e-5, rtol=1e-5), \
        f"no-mask max abs err {jnp.max(jnp.abs(out_nm - ref_nm))}"

    print("KERNEL_OK")
</pallas_src>

<mosaic_0001>
module attributes {stable_mosaic.version = 11 : i64} {
  func.func @_attention_kernel(%arg0: i32, %arg1: memref<2x32xf32, #tpu.memory_space<vmem>>, %arg2: memref<2x32xf32, #tpu.memory_space<vmem>>, %arg3: memref<2x8x32xf32, #tpu.memory_space<vmem>>, %arg4: memref<2x8xf32, #tpu.memory_space<vmem>>, %arg5: memref<32x32xf32, #tpu.memory_space<vmem>>, %arg6: memref<32x32xf32, #tpu.memory_space<vmem>>, %arg7: memref<32x32xf32, #tpu.memory_space<vmem>>, %arg8: memref<2x32xf32, #tpu.memory_space<vmem>>) attributes {dimension_semantics = [#tpu.dimension_semantics<parallel>], iteration_bounds = array<i64: 1>, scalar_prefetch = 0 : i64, scratch_operands = 0 : i64, tpu.core_type = #tpu.core_type<tc>, window_params = [{transform_indices = @transform_0, window_bounds = array<i64: 2, 32>}, {transform_indices = @transform_1, window_bounds = array<i64: 2, 32>}, {transform_indices = @transform_2, window_bounds = array<i64: 2, 8, 32>}, {transform_indices = @transform_3, window_bounds = array<i64: 2, 8>}, {pipeline_mode = #tpu.pipeline_mode<synchronous>, transform_indices = @transform_4, window_bounds = array<i64: 32, 32>}, {pipeline_mode = #tpu.pipeline_mode<synchronous>, transform_indices = @transform_5, window_bounds = array<i64: 32, 32>}, {pipeline_mode = #tpu.pipeline_mode<synchronous>, transform_indices = @transform_6, window_bounds = array<i64: 32, 32>}, {transform_indices = @transform_7, window_bounds = array<i64: 2, 32>}]} {
    %c0 = arith.constant 0 : index
    %c0_0 = arith.constant 0 : index
    %0 = vector.load %arg1[%c0, %c0_0] : memref<2x32xf32, #tpu.memory_space<vmem>>, vector<2x32xf32>
    %c0_1 = arith.constant 0 : index
    %c0_2 = arith.constant 0 : index
    %1 = vector.load %arg2[%c0_1, %c0_2] : memref<2x32xf32, #tpu.memory_space<vmem>>, vector<2x32xf32>
    %c0_3 = arith.constant 0 : index
    %c0_4 = arith.constant 0 : index
    %c0_5 = arith.constant 0 : index
    %2 = vector.load %arg3[%c0_3, %c0_4, %c0_5] : memref<2x8x32xf32, #tpu.memory_space<vmem>>, vector<2x8x32xf32>
    %c0_6 = arith.constant 0 : index
    %c0_7 = arith.constant 0 : index
    %3 = vector.load %arg5[%c0_6, %c0_7] : memref<32x32xf32, #tpu.memory_space<vmem>>, vector<32x32xf32>
    %cst = arith.constant dense<0.000000e+00> : vector<2x32xf32>
    %4 = tpu.matmul %1, %3, %cst {dimension_numbers = #tpu.dot_dimension_numbers<[1], [0], [0], [1], [0, 0, 1, 1], [], []>} : vector<2x32xf32>, vector<32x32xf32>, vector<2x32xf32> -> vector<2x32xf32>
    %5 = vector.shape_cast %4 : vector<2x32xf32> to vector<2x1x32xf32>
    "tpu.trace_start"() <{level = 10 : i32, message = "bqh,bth->bqt"}> : () -> ()
    %cst_8 = arith.constant dense<0.000000e+00> : vector<2x1x8xf32>
    %6 = tpu.matmul %5, %2, %cst_8 {dimension_numbers = #tpu.dot_dimension_numbers<[2], [2], [1], [1], [0, 0, 0, 1, 1, 1], [0], [0]>} : vector<2x1x32xf32>, vector<2x8x32xf32>, vector<2x1x8xf32> -> vector<2x1x8xf32>
    "tpu.trace_stop"() : () -> ()
    %7 = vector.shape_cast %6 : vector<2x1x8xf32> to vector<2x8xf32>
    %c0_9 = arith.constant 0 : index
    %c0_10 = arith.constant 0 : index
    %8 = vector.load %arg4[%c0_9, %c0_10] : memref<2x8xf32, #tpu.memory_space<vmem>>, vector<2x8xf32>
    %9 = arith.addf %7, %8 : vector<2x8xf32>
    %cst_11 = arith.constant dense<0xFF800000> : vector<2xf32>
    %10 = vector.multi_reduction <maximumf>, %9, %cst_11 [1] : vector<2x8xf32> to vector<2xf32>
    %11 = vector.shape_cast %10 : vector<2xf32> to vector<2x1xf32>
    %12 = vector.broadcast %11 : vector<2x1xf32> to vector<2x8xf32>
    %13 = arith.subf %9, %12 : vector<2x8xf32>
    %14 = math.exp %13 : vector<2x8xf32>
    %cst_12 = arith.constant dense<0.000000e+00> : vector<2xf32>
    %15 = vector.multi_reduction <add>, %14, %cst_12 [1] : vector<2x8xf32> to vector<2xf32>
    %16 = vector.shape_cast %15 : vector<2xf32> to vector<2x1xf32>
    %17 = tpu.reciprocal %16 : vector<2x1xf32> -> vector<2x1xf32>
    %18 = vector.shape_cast %14 : vector<2x8xf32> to vector<2x8x1xf32>
    %19 = vector.broadcast %18 : vector<2x8x1xf32> to vector<2x8x32xf32>
    %20 = arith.mulf %19, %2 : vector<2x8x32xf32>
    %cst_13 = arith.constant dense<0.000000e+00> : vector<2x32xf32>
    %21 = vector.multi_reduction <add>, %20, %cst_13 [1] : vector<2x8x32xf32> to vector<2x32xf32>
    %22 = vector.broadcast %17 : vector<2x1xf32> to vector<2x32xf32>
    %23 = arith.mulf %21, %22 : vector<2x32xf32>
    %c0_14 = arith.constant 0 : index
    %c0_15 = arith.constant 0 : index
    %24 = vector.load %arg6[%c0_14, %c0_15] : memref<32x32xf32, #tpu.memory_space<vmem>>, vector<32x32xf32>
    %cst_16 = arith.constant dense<0.000000e+00> : vector<2x32xf32>
    %25 = tpu.matmul %0, %24, %cst_16 {dimension_numbers = #tpu.dot_dimension_numbers<[1], [0], [0], [1], [0, 0, 1, 1], [], []>} : vector<2x32xf32>, vector<32x32xf32>, vector<2x32xf32> -> vector<2x32xf32>
    %c0_17 = arith.constant 0 : index
    %c0_18 = arith.constant 0 : index
    %26 = vector.load %arg7[%c0_17, %c0_18] : memref<32x32xf32, #tpu.memory_space<vmem>>, vector<32x32xf32>
    %cst_19 = arith.constant dense<0.000000e+00> : vector<2x32xf32>
    %27 = tpu.matmul %23, %26, %cst_19 {dimension_numbers = #tpu.dot_dimension_numbers<[1], [0], [0], [1], [0, 0, 1, 1], [], []>} : vector<2x32xf32>, vector<32x32xf32>, vector<2x32xf32> -> vector<2x32xf32>
    %28 = arith.addf %25, %27 : vector<2x32xf32>
    %29 = math.tanh %28 : vector<2x32xf32>
    %c0_20 = arith.constant 0 : index
    %c0_21 = arith.constant 0 : index
    %30 = vector.load %arg8[%c0_20, %c0_21] : memref<2x32xf32, #tpu.memory_space<vmem>>, vector<2x32xf32>
    tpu.vector_store %arg8[%c0_20, %c0_21], %29 {strides = array<i32>} : memref<2x32xf32, #tpu.memory_space<vmem>>, vector<2x32xf32>,
    return
  }
  func.func @transform_0(%arg0: i32) -> (i32, i32) {
    %c0_i32 = arith.constant 0 : i32
    %c0_i32_0 = arith.constant 0 : i32
    return %arg0, %c0_i32 : i32, i32
  }
  func.func @transform_1(%arg0: i32) -> (i32, i32) {
    %c0_i32 = arith.constant 0 : i32
    %c0_i32_0 = arith.constant 0 : i32
    return %arg0, %c0_i32 : i32, i32
  }
  func.func @transform_2(%arg0: i32) -> (i32, i32, i32) {
    %c0_i32 = arith.constant 0 : i32
    %c0_i32_0 = arith.constant 0 : i32
    %c0_i32_1 = arith.constant 0 : i32
    return %arg0, %c0_i32, %c0_i32_0 : i32, i32, i32
  }
  func.func @transform_3(%arg0: i32) -> (i32, i32) {
    %c0_i32 = arith.constant 0 : i32
    %c0_i32_0 = arith.constant 0 : i32
    return %arg0, %c0_i32 : i32, i32
  }
  func.func @transform_4(%arg0: i32) -> (i32, i32) {
    %c0_i32 = arith.constant 0 : i32
    %c0_i32_0 = arith.constant 0 : i32
    %c0_i32_1 = arith.constant 0 : i32
    return %c0_i32, %c0_i32_0 : i32, i32
  }
  func.func @transform_5(%arg0: i32) -> (i32, i32) {
    %c0_i32 = arith.constant 0 : i32
    %c0_i32_0 = arith.constant 0 : i32
    %c0_i32_1 = arith.constant 0 : i32
    return %c0_i32, %c0_i32_0 : i32, i32
  }
  func.func @transform_6(%arg0: i32) -> (i32, i32) {
    %c0_i32 = arith.constant 0 : i32
    %c0_i32_0 = arith.constant 0 : i32
    %c0_i32_1 = arith.constant 0 : i32
    return %c0_i32, %c0_i32_0 : i32, i32
  }
  func.func @transform_7(%arg0: i32) -> (i32, i32) {
    %c0_i32 = arith.constant 0 : i32
    %c0_i32_0 = arith.constant 0 : i32
    return %arg0, %c0_i32 : i32, i32
  }
}

</mosaic_0001>

<bundles_post_ra>
// kernel: tpu_custom_call.1
= control target key start
LH: loop header
LB: loop body
LE: loop exit
PB: predicated region body
PF: predicated region fallthrough
CT: control target
= control target key end

     0   :  { %12 = vsyncpa [#allocation3], 0  ;;  %s661_s0 = inlined_call_operand.hbm [shape: f32[2,32], index: 0, kind: input, shape index: {}]   ;;  %s662_s1 = inlined_call_operand.hbm [shape: f32[2,32], index: 1, kind: input, shape index: {}]   ;;  %s663_s2 = inlined_call_operand.hbm [shape: f32[2,8,32], index: 2, kind: input, shape index: {}]   ;;  %s664_s3 = inlined_call_operand.vmem [shape: f32[2,8], index: 3, kind: input, shape index: {}]   ;;  %s665_s4 = inlined_call_operand.hbm [shape: f32[32,32], index: 4, kind: input, shape index: {}]   ;;  %s666_s5 = inlined_call_operand.hbm [shape: f32[32,32], index: 5, kind: input, shape index: {}]   ;;  %s667_s6 = inlined_call_operand.hbm [shape: f32[32,32], index: 6, kind: input, shape index: {}]   ;;  %s668_s7 = inlined_call_operand.hbm [shape: f32[2,32], index: 7, kind: output, shape index: {}]  }
   0x1   :  { %13 = vsyncpa [#allocation6], 0 }
   0x2   :  { %14 = vsyncpa [#allocation9], 0 }
   0x3   :  { %15 = vsyncpa [#allocation12], 0  ;;  %s33_s26 = sshll.u32 %s662_s1, 4  ;;  %s34_s26 = int_to_ptr.hbm [resolvable:$true] %s33_s26 }
   0x4   :  { %16 = vsyncpa [#allocation4], 0  ;;  %s570_s27 = smov [#allocation5]   ;;  %s58_s8 = sshll.u32 %s665_s4, 4  ;;  %s59_s8 = int_to_ptr.hbm [resolvable:$true] %s58_s8 }
   0x5   :  { %s35_s28 = sshll.u32 %s570_s27, 4  ;;  %s571_s9 = smov [#allocation8]   ;;  %s36_s28 = int_to_ptr.vmem [resolvable:$true] %s35_s28 }
   0x6   :  { %38 = dma.hbm_to_vmem [thread:$0]  %s34_s26, 32, %s36_s28, [#allocation6]  }
   0x7   :  { %s60_s10 = sshll.u32 %s571_s9, 4  ;;  %s22_s13 = sshll.u32 %s661_s0, 4  ;;  %s61_s10 = int_to_ptr.vmem [resolvable:$true] %s60_s10  ;;  %s23_s13 = int_to_ptr.hbm [resolvable:$true] %s22_s13 }
   0x8   :  { %s572_s1 = smov 128   ;;  %s573_s14 = smov 8  }
   0x9   :  { %66 = dma.hbm_to_vmem [thread:$0]  %s59_s8, 512, %s61_s10, [#allocation9], %s572_s1, %s572_s1, %s573_s14  }
   0xa   :  { %s43_s17 = sshll.u32 %s663_s2, 4  ;;  %s574_s18 = smov [#allocation2]   ;;  %s44_s17 = int_to_ptr.hbm [resolvable:$true] %s43_s17 }
   0xb   :  { %s24_s19 = sshll.u32 %s574_s18, 4  ;;  %s575_s4 = smov [#allocation7]   ;;  %s25_s19 = int_to_ptr.vmem [resolvable:$true] %s24_s19 }
   0xc   :  { %27 = dma.hbm_to_vmem [thread:$0]  %s23_s13, 32, %s25_s19, [#allocation3]  }
   0xd   :  { %s45_s20 = sshll.u32 %s575_s4, 4  ;;  %s71_s0 = sshll.u32 %s666_s5, 4  ;;  %s46_s20 = int_to_ptr.vmem [resolvable:$true] %s45_s20  ;;  %s72_s0 = int_to_ptr.hbm [resolvable:$true] %s71_s0 }
   0xe   :  { %51 = dma.hbm_to_vmem [thread:$0]  %s44_s17, 256, %s46_s20, [#allocation6], %s572_s1, %s572_s1, %s573_s14  }
   0xf   :  { %s84_s25 = sshll.u32 %s667_s6, 4  ;;  %s576_s26 = smov [#allocation10]   ;;  %s85_s25 = int_to_ptr.hbm [resolvable:$true] %s84_s25 }
  0x10   :  { %s73_s2 = sshll.u32 %s576_s26, 4  ;;  %s577_s27 = smov [#allocation11]   ;;  %s74_s2 = int_to_ptr.vmem [resolvable:$true] %s73_s2 }
  0x11   :  { %79 = dma.hbm_to_vmem [thread:$0]  %s72_s0, 512, %s74_s2, [#allocation9], %s572_s1, %s572_s1, %s573_s14  }
  0x12   :  { %s86_s28 = sshll.u32 %s577_s27, 4  ;;  %s87_s28 = int_to_ptr.vmem [resolvable:$true] %s86_s28 }
  0x13   :  { %92 = dma.hbm_to_vmem [thread:$0]  %s85_s25, 512, %s87_s28, [#allocation12], %s572_s1, %s572_s1, %s573_s14  }
  0x14   :  { %560 = dma.done.wait [#allocation3], 32  }
  0x15   :  { %561 = vsyncadd [#allocation3], 4294967264 }
  0x16   :  { %562 = dma.done.wait [#allocation6], 288  }
  0x17   :  { %563 = vsyncadd [#allocation6], 4294967008 }
  0x18   :  { %564 = dma.done.wait [#allocation9], 1024  }
  0x19   :  { %565 = vsyncadd [#allocation9], 4294966272 }
  0x1a   :  { %566 = dma.done.wait [#allocation12], 512  }
  0x1b   :  { %567 = vsyncadd [#allocation12], 4294966784  ;;  %v124_v0 = vld [vmem:[#allocation8 + $0x18] sm:$0xff]  ;;  %v123_v1 = vld [vmem:[#allocation8 + $0x10] sm:$0xff]  ;;  %vm125_vm0 = vcmask 261120   ;;  %vm211_vm1 = vcmask 1041409   ;;  %v251_v18 = vlaneseq }
  0x1c   :  { %141 = vmatpush.msra.mxu0 %v124_v0  ;;  %v637_v2 = vld [vmem:[#allocation7] sm:$0xff]  ;;  %v122_v3 = vld [vmem:[#allocation8 + $0x8] sm:$0xff]  ;;  %v121_v4 = vld [vmem:[#allocation8] sm:$0xff]  ;;  %vm214_vm2 = vcmask 58368   ;;  %s353_s9 = sshll.u32 %s668_s7, 4  ;;  %vm344_vm7 = vcmask 254976   ;;  %s354_s9 = int_to_ptr.hbm [resolvable:$true] %s353_s9 }
  0x1d   :  { %367 = vmatpush.xpose.msk.msra.mxu1 %vm125_vm0, %v637_v2  ;;  %v118_v5 = vld [vmem:[#allocation5] sm:$0x3]  ;;  %v120_v6 = vld [vmem:[#allocation7 + $0x8] sm:$0xff]  ;;  %v201_v9 = vld [vmem:[%s664_s3] sm:$0x3]  ;;  %v252_v19 = vshrl.u32 %v251_v18, 7 }
  0x1e   :  { %142 = vmatpush.msra.mxu0 %v123_v1  ;;  %369 = vmatpush.xpose.msk.msra.mxu2 %vm125_vm0, %v120_v6  ;;  %v203_v10 = vrot.slane %v201_v9, 1  ;;  %v293_v33 = vld [vmem:[#allocation11 + $0x18] sm:$0xff]  ;;  %v292_v34 = vld [vmem:[#allocation11 + $0x10] sm:$0xff]  ;;  %v291_v36 = vld [vmem:[#allocation11 + $0x8] sm:$0xff]  ;;  %s578_s3 = smov [#allocation13]  }
  0x1f   :  { %382 = vset.pattern.permute.xlu1 %v252_v19  ;;  %383 = vset.pattern.permute.xlu0 %v252_v19  ;;  %v289_v35 = vld [vmem:[#allocation10 + $0x18] sm:$0xff]  ;;  %v290_v37 = vld [vmem:[#allocation11] sm:$0xff]  ;;  %v288_v38 = vld [vmem:[#allocation10 + $0x10] sm:$0xff]  ;;  %s351_s29 = sshll.u32 %s578_s3, 4  ;;  %s352_s29 = int_to_ptr.vmem [resolvable:$true] %s351_s29 }
  0x20   :  { %143 = vmatpush.msra.mxu0 %v122_v3  ;;  %312 = vmatpush.msra.mxu3 %v293_v33  ;;  %v287_v39 = vld [vmem:[#allocation10 + $0x8] sm:$0xff]  ;;  %v286_v40 = vld [vmem:[#allocation10] sm:$0xff] }
  0x21   :  { %335 = vmatpush.msrb.mxu1 %v289_v35  ;;  %v117_v41 = vld [vmem:[#allocation2] sm:$0x3] }
  0x22   :  { %144 = vmatpush.msra.mxu0 %v121_v4  ;;  %313 = vmatpush.msra.mxu3 %v292_v34 }
  0x23   :  { %366 = vmatmul.msk.f32.vlgmr.msra.gmra.mxu0 %vm125_vm0, %v118_v5  ;;  %336 = vmatpush.msrb.mxu1 %v288_v38 }
  0x24   :  { %314 = vmatpush.msra.mxu3 %v291_v36 }
  0x25   :  { %337 = vmatpush.msrb.mxu1 %v287_v39 }
  0x26   :  { %315 = vmatpush.msra.mxu3 %v290_v37 }
  0x27   :  { %338 = vmatpush.msrb.mxu1 %v286_v40 }
  0xa0   :  { %v146_v7 = vpop.f32.mrf.mxu0 }
  0xa1   :  { %v150_v8 = vrot.slane %v146_v7, 1  ;;  %368 = vmatmul.msk.f32.vlgmr.msra.gmra.mxu1 %vm125_vm0, %v146_v7 }
  0xa3   :  { %370 = vmatmul.msk.f32.vlgmr.msra.gmra.mxu2 %vm125_vm0, %v150_v8 }
  0xa9   :  { %372 = vmatmul.msk.f32.vlgmr.msrb.gmra.mxu1 %vm125_vm0, %v117_v41 }
 0x11e   :  { %v173_v11 = vpop.f32.mrf.mxu1 }
 0x11f   :  { %v206_v14 = vadd.f32 %v201_v9, %v173_v11 }
 0x126   :  { %v198_v12 = vpop.f32.mrf.mxu2 }
 0x127   :  { %v207_v13 = vadd.f32 %v203_v10, %v198_v12  ;;  %v340_v12 = vpop.f32.mrf.mxu1 }
 0x129   :  { %v210_v15 = vrot.slane %v207_v13, 7 }
 0x12b   :  { %v212_v16 = vsel %vm211_vm1, %v210_v15, %v206_v14 }
 0x12c   :  { %v215_v17 = vsel %vm214_vm2, %v212_v16, -inf }
 0x12d   :  { %216 = vmax.xlane.f32.xlu0 %v215_v17 }
 0x1a0   :  { %v217_v20 = vpop.xlane.xlu0 %216 }
 0x1a1   :  { %v219_v21 = vrot.slane %v217_v20, 1  ;;  %v222_v22 = vsub.f32 %v206_v14, %v217_v20 }
 0x1a3   :  { %v223_v23 = vsub.f32 %v207_v13, %v219_v21  ;;  %v224_v24 = vmul.f32 1.442695, %v222_v22 }
 0x1a5   :  { %v226_v25 = vmul.f32 1.442695, %v223_v23 }
 0x1a7   :  { %384 = vpow2.f32 %v226_v25 }
 0x1a8   :  { %386 = vpow2.f32 %v224_v24 }
 0x1ad   :  { %v385_v26 = vpop.eup %384 }
 0x1ae   :  { %v257_v27 = vperm.slane %v385_v26, 0  ;;  %v230_v28 = vrot.slane %v385_v26, 7  ;;  %v387_v29 = vpop.eup %386 }
 0x1af   :  { %v250_v32 = vperm.slane %v387_v29, 0 }
 0x1b0   :  { %262 = vperm.xlu1 %382, %v257_v27   ;;  %v231_v30 = vsel %vm211_vm1, %v230_v28, %v387_v29 }
 0x1b1   :  { %v233_v31 = vsel %vm214_vm2, %v231_v30, 0.0 }
 0x1b2   :  { %234 = vadd.xlane.f32.xlu0 %v233_v31 }
 0x1b8   :  { %255 = vperm.xlu1 %382, %v250_v32  }
 0x222   :  { %v263_v42 = vpop.permute.xlu1 %262 }
 0x223   :  { %v265_v43 = vmul.f32 %v263_v42, %v120_v6 }
 0x225   :  { %v273_v44 = vsel %vm125_vm0, %v265_v43, 0.0  ;;  %v235_v45 = vpop.xlane.xlu0 %234 }
 0x226   :  { %v274_v46 = vrot.slane %v273_v44, 4  ;;  %388 = vrcp.f32 %v235_v45  ;;  %v247_v57 = vand.u32 2147483648, %v235_v45  ;;  %v245_v60 = vand.u32 2147483647, %v235_v45 }
 0x227   :  { %vm241_vm4 = vweird.f32 %v235_v45 }
 0x228   :  { %v275_v47 = vadd.f32 %v274_v46, %v273_v44  ;;  %v248_v0 = vor.u32 1.1754944e-38, %v247_v57  ;;  %vm246_vm6 = vcmp.eq.f32.partialorder %v245_v60, 8.507059e+37 }
 0x22a   :  { %v256_v48 = vpop.permute.xlu1 %255  ;;  %v276_v49 = vrot.slane %v275_v47, 2 }
 0x22b   :  { %v264_v50 = vmul.f32 %v256_v48, %v637_v2 }
 0x22c   :  { %v389_v51 = vpop.eup %388  ;;  %v277_v55 = vadd.f32 %v276_v49, %v275_v47 }
 0x22d   :  { %v237_v52 = vmul.f32 %v389_v51, %v235_v45  ;;  %v266_v53 = vsel %vm125_vm0, %v264_v50, 0.0  ;;  %vm242_vm3 = vweird.f32 %v389_v51 }
 0x22e   :  { %v267_v54 = vrot.slane %v266_v53, 4  ;;  %v278_v62 = vrot.slane %v277_v55, 1  ;;  %vm243_vm5 = vmor %vm241_vm4, %vm242_vm3 }
 0x22f   :  { %v238_v56 = vsub.f32 1.0, %v237_v52 }
 0x230   :  { %v268_v58 = vadd.f32 %v267_v54, %v266_v53  ;;  %v279_v5 = vadd.f32 %v278_v62, %v277_v55 }
 0x231   :  { %v239_v59 = vmul.f32 %v389_v51, %v238_v56 }
 0x232   :  { %v269_v61 = vrot.slane %v268_v58, 2 }
 0x233   :  { %v240_v63 = vadd.f32 %v389_v51, %v239_v59 }
 0x234   :  { %v270_v1 = vadd.f32 %v269_v61, %v268_v58 }
 0x235   :  { %v244_v2 = vsel %vm243_vm5, %v389_v51, %v240_v63 }
 0x236   :  { %v271_v3 = vrot.slane %v270_v1, 1  ;;  %v249_v4 = vsel %vm246_vm6, %v248_v0, %v244_v2 }
 0x237   :  { %v281_v6 = vrot.slane %v249_v4, 1 }
 0x238   :  { %v272_v7 = vadd.f32 %v271_v3, %v270_v1 }
 0x239   :  { %v285_v8 = vmul.f32 %v281_v6, %v279_v5 }
 0x23a   :  { %v284_v9 = vmul.f32 %v272_v7, %v249_v4 }
 0x23b   :  { %v296_v10 = vrot.slane %v285_v8, 7 }
 0x23d   :  { %v297_v11 = vsel %vm211_vm1, %v296_v10, %v284_v9 }
 0x23e   :  { %371 = vmatmul.msk.f32.vlgmr.msra.gmra.mxu3 %vm125_vm0, %v297_v11 }
 0x2c1   :  { %v317_v13 = vpop.f32.mrf.mxu3 }
 0x2c2   :  { %v341_v14 = vadd.f32 %v340_v12, %v317_v13 }
 0x2c4   :  { %390 = vtanh.f32 %v341_v14 }
 0x2ca   :  { %v391_v15 = vpop.eup %390 }
 0x2cb   :  { %345 = vst.msk [vmem:[#allocation13] sm:$0x3] %vm344_vm7, %v391_v15 }
 0x2cc   :  { %356 = dma.vmem_to_hbm [thread:$0]  %s352_s29, 32, %s354_s9, [#allocation4]  }
 0x2cd   :  { %568 = dma.done.wait [#allocation4], 32  }
 0x2ce   :  { %569 = vsyncadd [#allocation4], 4294967264 }
 0x2cf   :  { %361 = vsyncpa [#allocation3], 1 }
 0x2d0   :  { %362 = vsyncpa [#allocation6], 1 }
 0x2d1   :  { %363 = vsyncpa [#allocation9], 1 }
 0x2d2   :  { %364 = vsyncpa [#allocation12], 1 }
 0x2d3   :  { %365 = vsyncpa [#allocation4], 1 }

</bundles_post_ra>
